<compile_context>
chip_gen: v5e
topology: v5e:2x2
jax: 0.10.0
libtpu: 0.0.40
codegen_flags: <defaults>
</compile_context>

<pallas_src>
import functools

import jax
import jax.numpy as jnp
from jax.experimental import pallas as pl
from jax.experimental.pallas import tpu as pltpu


def _round_up(x: int, m: int) -> int:
    return ((x + m - 1) // m) * m


def _moe_gate_kernel(x_ref, w_ref, o_ref):
    """One (tm, Ep) tile of logits = x @ w_prepared.

    x_ref: (tm, H)   -- one token tile, full hidden dim
    w_ref: (H, Ep)   -- full prepared (padded + pre-transposed) gate weight,
                        resident in VMEM (constant block index)
    o_ref: (tm, Ep)
    """
    o_ref[...] = jnp.dot(
        x_ref[...], w_ref[...], preferred_element_type=jnp.float32
    ).astype(o_ref.dtype)


def prepare_gate_weight(weight):
    """Pad the expert dim to a multiple of 128 and pre-transpose to (H, Ep).

    Call ONCE at model init (weights are static across calls); the result is
    what moe_gate_forward_prepared consumes.  Padded expert columns are zero
    so their logits are exactly zero and are sliced off after the kernel.
    """
    E, H = weight.shape
    Ep = _round_up(E, 128)
    w = weight if Ep == E else jnp.pad(weight, ((0, Ep - E), (0, 0)))
    return jnp.transpose(w)  # (H, Ep), canonical (K, N) operand for the MXU


def _vmem_capacity_bytes() -> int:
    """Per-core VMEM capacity; conservative fallback if the query fails."""
    try:
        return int(pltpu.get_tpu_info().vmem_capacity_bytes)
    except Exception:
        return 64 * 1024 * 1024  # v7x per-TensorCore VMEM (smallest current gen)


def _choose_tm(T, H, Ep, x_item, w_item, o_item, tm_max, vmem_budget):
    """Largest token tile whose working set fits the VMEM budget.

    Rounds to the dtype-dependent sublane multiple (128-multiples when enough
    tokens are available -> full MXU M-tiles, matters most on v5e) and keeps
    the token grid at >= 2 steps when possible (v7x megacore + pipelining).
    """
    sub = {1: 32, 2: 16}.get(x_item, 8)   # min sublane tile per activation dtype
    gran = 128 if T >= 256 else sub
    tm = min(tm_max, _round_up(T, gran))
    if T > gran:  # ensure at least 2 grid steps when tokens allow
        tm = min(tm, _round_up(pl.cdiv(T, 2), gran))
    tm = max(gran, tm)

    def fits(t):
        # double-buffered x / out tiles + resident (double-buffered) weight,
        # each counted at its own dtype width.
        need = 2 * t * H * x_item + 2 * H * Ep * w_item + 2 * t * Ep * o_item
        return need <= vmem_budget

    while tm > gran and not fits(tm):
        tm = max(gran, _round_up(tm // 2, gran))
    return tm


@functools.partial(jax.jit, static_argnames=("n_experts", "tm_max", "out_dtype"))
def moe_gate_forward_prepared(hidden_states, w_prepared, n_experts,
                              *, tm_max: int = 1024, out_dtype=jnp.float32):
    """logits = hidden_states @ weight.T using a prepared (H, Ep) weight.

    hidden_states: (T, H)
    w_prepared:    (H, Ep)  from prepare_gate_weight(weight)
    returns:       (T, n_experts) in out_dtype (float32 by default: routing
                   logits feed top-k and are dtype-sensitive).
    """
    T, H = hidden_states.shape
    H2, Ep = w_prepared.shape
    assert H == H2, "hidden_size mismatch between hidden_states and prepared weight"
    assert Ep % 128 == 0 and n_experts <= Ep

    x_item = jnp.dtype(hidden_states.dtype).itemsize
    w_item = jnp.dtype(w_prepared.dtype).itemsize
    o_item = jnp.dtype(out_dtype).itemsize

    # Generation-aware VMEM budget: ~51 MiB on v7x (64 MiB physical, leave
    # headroom for Mosaic scratch), ~102 MiB on v5e/v6e (128 MiB physical).
    cap = _vmem_capacity_bytes()
    budget = max(min(int(cap * 0.80), cap - 12 * 1024 * 1024), 32 * 1024 * 1024)

    tm = _choose_tm(T, H, Ep, x_item, w_item, o_item, tm_max, budget)
    grid = (pl.cdiv(T, tm),)  # no token padding: Pallas handles the partial last block

    vmem_need = 2 * tm * H * x_item + 2 * H * Ep * w_item + 2 * tm * Ep * o_item
    vmem_limit = int(min(max(vmem_need + (4 << 20), 32 << 20), budget))
    vmem_limit = max(vmem_limit, min(vmem_need + (2 << 20), cap))  # never below actual need

    cost = pl.CostEstimate(
        flops=2 * T * H * Ep,
        transcendentals=0,
        bytes_accessed=T * H * x_item + H * Ep * w_item + T * Ep * o_item,
    )

    logits_padded = pl.pallas_call(
        _moe_gate_kernel,
        out_shape=jax.ShapeDtypeStruct((T, Ep), out_dtype),
        grid_spec=pltpu.PrefetchScalarGridSpec(
            num_scalar_prefetch=0,
            grid=grid,
            in_specs=[
                # x tile: token rows follow the (only) grid axis, full hidden dim.
                pl.BlockSpec((tm, H), lambda i: (i, 0)),
                # full prepared weight, constant block index -> resident in VMEM,
                # fetched once rather than re-DMA'd per step; already (K, N) so
                # no per-step transpose is emitted.
                pl.BlockSpec((H, Ep), lambda i: (0, 0)),
            ],
            out_specs=pl.BlockSpec((tm, Ep), lambda i: (i, 0)),
        ),
        compiler_params=pltpu.CompilerParams(
            dimension_semantics=("parallel",),
            vmem_limit_bytes=vmem_limit,
        ),
        cost_estimate=cost,
    )(hidden_states, w_prepared)

    # Drop the zero-padded expert columns.  (Padded columns MUST be removed or
    # masked before any downstream softmax/top-k routing.)
    return logits_padded[:, :n_experts]


def moe_gate_forward(hidden_states, weight, **kwargs):
    """Convenience one-shot wrapper matching MoEGate.forward(hidden_states).

    In a real model, call prepare_gate_weight once at init and use
    moe_gate_forward_prepared on the hot path (weight pad/transpose is static).
    """
    w_prepared = prepare_gate_weight(weight)
    return moe_gate_forward_prepared(hidden_states, w_prepared, weight.shape[0], **kwargs)


if __name__ == "__main__":
    # Small, TPU-friendly config consistent with the module:
    #   hidden_size = 256, n_routed_experts = 64, num_tokens = 128
    hidden_size = 256
    n_routed_experts = 64
    num_tokens = 128

    key = jax.random.PRNGKey(0)
    k_x, k_w, k_b, k_x2, k_x3 = jax.random.split(key, 5)

    hidden_states = jax.random.normal(k_x, (num_tokens, hidden_size), dtype=jnp.float32)
    # nn.Parameter(torch.empty((n_routed_experts, hidden_size))) -- deterministic init here.
    weight = jax.random.normal(k_w, (n_routed_experts, hidden_size), dtype=jnp.float32) * 0.02
    # topk_method == 'noaux_tc' branch: bias exists but is unused in forward().
    e_score_correction_bias = jax.random.normal(k_b, (n_routed_experts,), dtype=jnp.float32)

    # Prepare (pad + pre-transpose) the gate weight once, off the hot path.
    w_prepared = prepare_gate_weight(weight)

    logits = moe_gate_forward_prepared(hidden_states, w_prepared, n_routed_experts)
    logits = jax.block_until_ready(logits)
    ref = (hidden_states @ weight.T).astype(jnp.float32)
    assert logits.shape == (num_tokens, n_routed_experts)
    assert logits.dtype == jnp.dtype(jnp.float32)
    assert jnp.allclose(logits, ref, atol=1e-4, rtol=1e-4), "mismatch vs reference"

    # Ragged token count (not a multiple of the tile) -> partial-last-block path
    # (no wrapper-side padding of x).
    ragged_T = 100
    hs2 = jax.random.normal(k_x2, (ragged_T, hidden_size), dtype=jnp.float32)
    logits2 = jax.block_until_ready(
        moe_gate_forward_prepared(hs2, w_prepared, n_routed_experts))
    ref2 = hs2 @ weight.T
    assert logits2.shape == (ragged_T, n_routed_experts)
    assert jnp.allclose(logits2, ref2, atol=1e-4, rtol=1e-4), "ragged mismatch vs reference"

    # Decode-shaped tiny batch.
    hs3 = jax.random.normal(k_x3, (3, hidden_size), dtype=jnp.float32)
    logits3 = jax.block_until_ready(
        moe_gate_forward_prepared(hs3, w_prepared, n_routed_experts))
    ref3 = hs3 @ weight.T
    assert logits3.shape == (3, n_routed_experts)
    assert jnp.allclose(logits3, ref3, atol=1e-4, rtol=1e-4), "tiny-T mismatch vs reference"

    print("KERNEL_OK")
</pallas_src>

<mosaic_0001>
module attributes {stable_mosaic.version = 11 : i64} {
  func.func @_moe_gate_kernel(%arg0: i32, %arg1: memref<64x256xf32, #tpu.memory_space<vmem>>, %arg2: memref<256x128xf32, #tpu.memory_space<vmem>>, %arg3: memref<64x128xf32, #tpu.memory_space<vmem>>) attributes {dimension_semantics = [#tpu.dimension_semantics<parallel>], iteration_bounds = array<i64: 2>, scalar_prefetch = 0 : i64, scratch_operands = 0 : i64, tpu.core_type = #tpu.core_type<tc>, window_params = [{transform_indices = @transform_0, window_bounds = array<i64: 64, 256>}, {pipeline_mode = #tpu.pipeline_mode<synchronous>, transform_indices = @transform_1, window_bounds = array<i64: 256, 128>}, {transform_indices = @transform_2, window_bounds = array<i64: 64, 128>}]} {
    %c0 = arith.constant 0 : index
    %c0_0 = arith.constant 0 : index
    %0 = vector.load %arg1[%c0, %c0_0] : memref<64x256xf32, #tpu.memory_space<vmem>>, vector<64x256xf32>
    %c0_1 = arith.constant 0 : index
    %c0_2 = arith.constant 0 : index
    %1 = vector.load %arg2[%c0_1, %c0_2] : memref<256x128xf32, #tpu.memory_space<vmem>>, vector<256x128xf32>
    %cst = arith.constant dense<0.000000e+00> : vector<64x128xf32>
    %2 = tpu.matmul %0, %1, %cst {dimension_numbers = #tpu.dot_dimension_numbers<[1], [0], [0], [1], [0, 0, 1, 1], [], []>} : vector<64x256xf32>, vector<256x128xf32>, vector<64x128xf32> -> vector<64x128xf32>
    %c0_3 = arith.constant 0 : index
    %c0_4 = arith.constant 0 : index
    %3 = vector.load %arg3[%c0_3, %c0_4] : memref<64x128xf32, #tpu.memory_space<vmem>>, vector<64x128xf32>
    tpu.vector_store %arg3[%c0_3, %c0_4], %2 {strides = array<i32>} : memref<64x128xf32, #tpu.memory_space<vmem>>, vector<64x128xf32>,
    return
  }
  func.func @transform_0(%arg0: i32) -> (i32, i32) {
    %c0_i32 = arith.constant 0 : i32
    %c0_i32_0 = arith.constant 0 : i32
    return %arg0, %c0_i32 : i32, i32
  }
  func.func @transform_1(%arg0: i32) -> (i32, i32) {
    %c0_i32 = arith.constant 0 : i32
    %c0_i32_0 = arith.constant 0 : i32
    %c0_i32_1 = arith.constant 0 : i32
    return %c0_i32, %c0_i32_0 : i32, i32
  }
  func.func @transform_2(%arg0: i32) -> (i32, i32) {
    %c0_i32 = arith.constant 0 : i32
    %c0_i32_0 = arith.constant 0 : i32
    return %arg0, %c0_i32 : i32, i32
  }
}

</mosaic_0001>

<bundles_post_ra>
// kernel: moe_gate_forward_prepared.1
= control target key start
LH: loop header
LB: loop body
LE: loop exit
PB: predicated region body
PF: predicated region fallthrough
CT: control target
= control target key end

     0   :  { %7 = vsyncpa [#allocation3], 0  ;;  %s759_s0 = inlined_call_operand.hbm [shape: f32[128,256], index: 0, kind: input, shape index: {}]   ;;  %s760_s1 = inlined_call_operand.hbm [shape: f32[256,128], index: 1, kind: input, shape index: {}]   ;;  %s761_s2 = inlined_call_operand.vmem [shape: f32[128,128], index: 2, kind: output, shape index: {}]  }
   0x1   :  { %9 = vsyncpa [#allocation3 + $0x1], 0 }
   0x2   :  { %10 = vsyncpa [#allocation5], 0  ;;  %s625_s9 = smov 0   ;;  %s627_s10 = smov 0  }
   0x3   :  { %s629_s11 = smov 0   ;;  %s631_s12 = smov 0  }
   0x4 LB: > { %s401_s13 = sadd.s32 4294967295, %s603_s12   ;;  %p36_p0 = scmp.ne.s32.totalorder %s595_s10, %s591_s9  ;;  %s603_s12 = sphi %s631_s12, %s769_s12   ;;  %s599_s11 = sphi %s629_s11, %s768_s11   ;;  %s595_s10 = sphi %s627_s10, %s767_s10   ;;  %s591_s9 = sphi %s625_s9, %s766_s9  }
   0x5   : > { %p647_p1 = scmp.eq.s32.totalorder %s401_s13, 0  ;;  %p403_p2 = scmp.ge.s32.totalorder %s603_s12, 1 }
   0x6   : > { %p94_p3 = scmp.lt.s32.totalorder %s603_s12, 3  ;;  %s105_s18 = sshll.u32 %s760_s1, 4  ;;  %s106_s18 = int_to_ptr.hbm [resolvable:$true] %s105_s18 }
   0x7   : > { %p655_p4 = por %p647_p1, %p36_p0  ;;  %s605_s20 = smov [#allocation4]  }
   0x8   : > { %p662_p5 = pnand %p403_p2, %p94_p3  ;;  %s107_s21 = sshll.u32 %s605_s20, 4  ;;  %s108_s21 = int_to_ptr.vmem [resolvable:$true] %s107_s21 }
   0x9   : > { %s671_s22 = sadd.s32 1, %s603_s12   ;;  %s606_s23 = smov 128  }
   0xa   : > { %p457_p6 = pneg %p662_p5  ;;  %s607_s24 = smov 8  }
   0xb   : > { %s20_s25 = ssub.s32 %s603_s12, %s671_s22  ;;  %s23_s26 = sadd.s32 1, %s599_s11 }
   0xc   : > { %p458_p7 = pnand %p457_p6, %p647_p1  ;;  %p21_p8 = scmp.eq.s32.totalorder %s20_s25, 0 }
   0xd   : > { %p30_p9 = scmp.ne.s32.totalorder %s599_s11, %s595_s10  ;;  %p31_p10 = scmp.eq.s32.totalorder %s603_s12, 0 }
   0xe   : > { %460 = dma.hbm_to_vmem [thread:$0]  (!%p458_p7), %s106_s18, 4096, %s108_s21, [#allocation5], %s606_s23, %s606_s23, %s607_s24  }
   0xf   : > { %p466_p11 = scmp.lt.s32.totalorder %s603_s12, 2  ;;  %p32_p12 = por %p31_p10, %p30_p9 }
  0x10   : > { %s681_s27 = scalar_select %p21_p8, %s599_s11, %s23_s26  }
  0x11   : > { %s121_s28 = sand.u32 1, %s599_s11   ;;  %s418_s30 = sshll.u32 %s603_s12, 7 }
  0x12   : > { %s406_s29 = sshll.u32 %s121_s28, 7  ;;  %s131_s5 = scalar_lea.hbm %s759_s0, %s418_s30 }
  0x13   : > { %s125_s6 = scalar_lea.vmem [#allocation2], %s406_s29  ;;  %s132_s8 = sshll.u32 %s131_s5, 4  ;;  %s133_s8 = int_to_ptr.hbm [resolvable:$true] %s132_s8 }
  0x14   : > { %s134_s7 = sshll.u32 %s125_s6, 4  ;;  %p688_p13 = pnand %p466_p11, %p32_p12  ;;  %s135_s7 = int_to_ptr.vmem [resolvable:$true] %s134_s7 }
  0x15   : > { %s122_s16 = scalar_lea.sflag [#allocation3], %s121_s28  ;;  %s535_s17 = sshra.s32 %s133_s8, 4  ;;  %s536_s17 = int_to_ptr.hbm [resolvable:$true] %s535_s17 }
  0x16   : > { %s537_s18 = scalar_lea.hbm %s536_s17, 128  ;;  %p539_p2 = pneg %p688_p13 }
  0x17   : > { %p538_p0 = scmp.ne.s32.totalorder %s536_s17, %s537_s18  ;;  %s542_s23 = scalar_lea.hbm %s759_s0, 256 }
  0x18   : > { %p543_p7 = scmp.lt.s32.totalorder %s536_s17, %s759_s0  ;;  %p544_p8 = scmp.lt.s32.totalorder %s542_s23, %s537_s18 }
  0x19   : > { %p540_p3 = pnand %p539_p2, %p538_p0 }
  0x1a   : > { %p545_p9 = por %p544_p8, %p543_p7 }
  0x1b   : > { %p541_p6 = pneg %p540_p3 }
  0x1d   : > { %p546_p10 = pnand %p545_p9, %p541_p6 }
  0x1f   : > { %549 = shalt.err (!%p546_p10)
}
  0x20   : > { %s608_s26 = smov 256   ;;  %s609_s28 = smov 16  }
  0x21   : > { %464 = dma.hbm_to_vmem [thread:$0]  (!%p688_p13), %s133_s8, 2048, %s135_s7, %s122_s16, %s608_s26, %s608_s26, %s609_s28  }
  0x22   : > { %146 = sbr.rel (%p662_p5) target bundleno = 234 (0xea), region = 28  ;;  %s148_s29 = sand.u32 (!%p662_p5), 1, %s595_s10  }
  0x23   : > { %s411_s30 = sshll.u32 (!%p662_p5), %s148_s29, 7  ;;  %s149_s3 = scalar_lea.sflag (!%p662_p5), [#allocation3], %s148_s29 }
  0x24   : > { %s705_s4 = scalar_lea.vmem (!%p662_p5), [#allocation2], %s411_s30 }
  0x27   : > { %582 = dma.done.wait (%p655_p4), %s149_s3, 2048  }
  0x28   : > { %584 = vsyncadd (%p655_p4), %s149_s3, 4294965248 }
  0x29   : > { %586 = dma.done.wait (%p647_p1), [#allocation5], 4096  }
  0x2a   : > { %588 = vsyncadd (%p647_p1), [#allocation5], 4294963200  ;;  %v217_v0 = vld [vmem:[#allocation4 + $0x78] sm:$0xff]  ;;  %v216_v2 = vld [vmem:[#allocation4 + $0x70] sm:$0xff]  ;;  %s413_s14 = sshll.u32 %s401_s13, 3 }
  0x2b   : > { %v233_v1 = vld [vmem:[#allocation4 + $0xf8] sm:$0xff]  ;;  %419 = vmatpush.msra.mxu2 %v217_v0  ;;  %v232_v3 = vld [vmem:[#allocation4 + $0xf0] sm:$0xff]  ;;  %v215_v4 = vld [vmem:[#allocation4 + $0x68] sm:$0xff]  ;;  %234 = vmatpush.msra.mxu0 %v217_v0  ;;  %p181_p1 = scmp.lt.s32.totalorder %s413_s14, 15 }
  0x2c   : > { %435 = vmatpush.msra.mxu3 %v233_v1  ;;  %v231_v5 = vld [vmem:[#allocation4 + $0xe8] sm:$0xff]  ;;  %275 = vmatpush.msra.mxu1 %v233_v1  ;;  %v214_v6 = vld [vmem:[#allocation4 + $0x60] sm:$0xff]  ;;  %v213_v8 = vld [vmem:[#allocation4 + $0x58] sm:$0xff] }
  0x2d   : > { %420 = vmatpush.msra.mxu2 %v216_v2  ;;  %v230_v7 = vld [vmem:[#allocation4 + $0xe0] sm:$0xff]  ;;  %235 = vmatpush.msra.mxu0 %v216_v2  ;;  %v229_v9 = vld [vmem:[#allocation4 + $0xd8] sm:$0xff]  ;;  %v212_v10 = vld [vmem:[#allocation4 + $0x50] sm:$0xff]  ;;  %s771_s14 = smov (!%p181_p1, %s413_s14), 15 }
  0x2e   : > { %436 = vmatpush.msra.mxu3 %v232_v3  ;;  %276 = vmatpush.msra.mxu1 %v232_v3  ;;  %v228_v11 = vld [vmem:[#allocation4 + $0xd0] sm:$0xff]  ;;  %v211_v12 = vld [vmem:[#allocation4 + $0x48] sm:$0xff]  ;;  %v210_v14 = vld [vmem:[#allocation4 + $0x40] sm:$0xff]  ;;  %s414_s15 = sshll.u32 %s771_s14, 3 }
  0x2f   : > { %421 = vmatpush.msra.mxu2 %v215_v4  ;;  %236 = vmatpush.msra.mxu0 %v215_v4  ;;  %v227_v13 = vld [vmem:[#allocation4 + $0xc8] sm:$0xff]  ;;  %v226_v15 = vld [vmem:[#allocation4 + $0xc0] sm:$0xff]  ;;  %v209_v16 = vld [vmem:[#allocation4 + $0x38] sm:$0xff]  ;;  %s736_s6 = scalar_lea.vmem %s761_s2, %s414_s15 }
  0x30   : > { %437 = vmatpush.msra.mxu3 %v231_v5  ;;  %277 = vmatpush.msra.mxu1 %v231_v5  ;;  %v225_v17 = vld [vmem:[#allocation4 + $0xb8] sm:$0xff]  ;;  %v208_v18 = vld [vmem:[#allocation4 + $0x30] sm:$0xff]  ;;  %v207_v20 = vld [vmem:[#allocation4 + $0x28] sm:$0xff] }
  0x31   : > { %422 = vmatpush.msra.mxu2 %v214_v6  ;;  %237 = vmatpush.msra.mxu0 %v214_v6  ;;  %v224_v19 = vld [vmem:[#allocation4 + $0xb0] sm:$0xff]  ;;  %v223_v21 = vld [vmem:[#allocation4 + $0xa8] sm:$0xff]  ;;  %v206_v22 = vld [vmem:[#allocation4 + $0x20] sm:$0xff] }
  0x32   : > { %438 = vmatpush.msra.mxu3 %v230_v7  ;;  %278 = vmatpush.msra.mxu1 %v230_v7  ;;  %v222_v23 = vld [vmem:[#allocation4 + $0xa0] sm:$0xff]  ;;  %v205_v24 = vld [vmem:[#allocation4 + $0x18] sm:$0xff]  ;;  %v204_v26 = vld [vmem:[#allocation4 + $0x10] sm:$0xff] }
  0x33   : > { %423 = vmatpush.msra.mxu2 %v213_v8  ;;  %238 = vmatpush.msra.mxu0 %v213_v8  ;;  %v221_v25 = vld [vmem:[#allocation4 + $0x98] sm:$0xff]  ;;  %v220_v27 = vld [vmem:[#allocation4 + $0x90] sm:$0xff]  ;;  %v203_v28 = vld [vmem:[#allocation4 + $0x8] sm:$0xff] }
  0x34   : > { %439 = vmatpush.msra.mxu3 %v229_v9  ;;  %279 = vmatpush.msra.mxu1 %v229_v9  ;;  %v219_v29 = vld [vmem:[#allocation4 + $0x88] sm:$0xff]  ;;  %v202_v30 = vld [vmem:[#allocation4] sm:$0xff]  ;;  %v196_v36 = vld [vmem:[%s705_s4 + $0x50] sm:$0xff] }
  0x35   : > { %424 = vmatpush.msra.mxu2 %v212_v10  ;;  %239 = vmatpush.msra.mxu0 %v212_v10  ;;  %v218_v31 = vld [vmem:[#allocation4 + $0x80] sm:$0xff]  ;;  %v195_v33 = vld [vmem:[%s705_s4 + $0x48] sm:$0xff]  ;;  %v197_v37 = vld [vmem:[%s705_s4 + $0x58] sm:$0xff] }
  0x36   : > { %440 = vmatpush.msra.mxu3 %v228_v11  ;;  %280 = vmatpush.msra.mxu1 %v228_v11  ;;  %v194_v32 = vld [vmem:[%s705_s4 + $0x40] sm:$0xff]  ;;  %v187_v35 = vld [vmem:[%s705_s4 + $0x8] sm:$0xff]  ;;  %v188_v38 = vld [vmem:[%s705_s4 + $0x10] sm:$0xff] }
  0x37   : > { %425 = vmatpush.msra.mxu2 %v211_v12  ;;  %240 = vmatpush.msra.mxu0 %v211_v12  ;;  %v186_v34 = vld [vmem:[%s705_s4] sm:$0xff]  ;;  %v189_v39 = vld [vmem:[%s705_s4 + $0x18] sm:$0xff]  ;;  %v199_v41 = vld [vmem:[%s705_s4 + $0x68] sm:$0xff] }
  0x38   : > { %441 = vmatpush.msra.mxu3 %v227_v13  ;;  %281 = vmatpush.msra.mxu1 %v227_v13  ;;  %v198_v40 = vld [vmem:[%s705_s4 + $0x60] sm:$0xff]  ;;  %v191_v43 = vld [vmem:[%s705_s4 + $0x28] sm:$0xff]  ;;  %v200_v44 = vld [vmem:[%s705_s4 + $0x70] sm:$0xff] }
  0x39   : > { %426 = vmatpush.msra.mxu2 %v210_v14  ;;  %241 = vmatpush.msra.mxu0 %v210_v14  ;;  %v190_v42 = vld [vmem:[%s705_s4 + $0x20] sm:$0xff]  ;;  %v201_v45 = vld [vmem:[%s705_s4 + $0x78] sm:$0xff]  ;;  %v192_v46 = vld [vmem:[%s705_s4 + $0x30] sm:$0xff] }
  0x3a   : > { %442 = vmatpush.msra.mxu3 %v226_v15  ;;  %282 = vmatpush.msra.mxu1 %v226_v15  ;;  %v193_v47 = vld [vmem:[%s705_s4 + $0x38] sm:$0xff] }
  0x3b   : > { %427 = vmatpush.msra.mxu2 %v209_v16  ;;  %242 = vmatpush.msra.mxu0 %v209_v16 }
  0x3c   : > { %443 = vmatpush.msra.mxu3 %v225_v17  ;;  %283 = vmatpush.msra.mxu1 %v225_v17 }
  0x3d   : > { %428 = vmatpush.msra.mxu2 %v208_v18  ;;  %243 = vmatpush.msra.mxu0 %v208_v18 }
  0x3e   : > { %444 = vmatpush.msra.mxu3 %v224_v19  ;;  %284 = vmatpush.msra.mxu1 %v224_v19 }
  0x3f   : > { %429 = vmatpush.msra.mxu2 %v207_v20  ;;  %244 = vmatpush.msra.mxu0 %v207_v20 }
  0x40   : > { %445 = vmatpush.msra.mxu3 %v223_v21  ;;  %285 = vmatpush.msra.mxu1 %v223_v21 }
  0x41   : > { %430 = vmatpush.msra.mxu2 %v206_v22  ;;  %245 = vmatpush.msra.mxu0 %v206_v22 }
  0x42   : > { %446 = vmatpush.msra.mxu3 %v222_v23  ;;  %286 = vmatpush.msra.mxu1 %v222_v23 }
  0x43   : > { %431 = vmatpush.msra.mxu2 %v205_v24  ;;  %246 = vmatpush.msra.mxu0 %v205_v24 }
  0x44   : > { %447 = vmatpush.msra.mxu3 %v221_v25  ;;  %287 = vmatpush.msra.mxu1 %v221_v25 }
  0x45   : > { %432 = vmatpush.msra.mxu2 %v204_v26  ;;  %247 = vmatpush.msra.mxu0 %v204_v26 }
  0x46   : > { %448 = vmatpush.msra.mxu3 %v220_v27  ;;  %288 = vmatpush.msra.mxu1 %v220_v27 }
  0x47   : > { %433 = vmatpush.msra.mxu2 %v203_v28  ;;  %248 = vmatpush.msra.mxu0 %v203_v28 }
  0x48   : > { %449 = vmatpush.msra.mxu3 %v219_v29  ;;  %289 = vmatpush.msra.mxu1 %v219_v29 }
  0x49   : > { %434 = vmatpush.msra.mxu2 %v202_v30  ;;  %249 = vmatpush.msra.mxu0 %v202_v30 }
  0x4a   : > { %450 = vmatpush.msra.mxu3 %v218_v31  ;;  %262 = vmatmul.f32.vlgmr.msra.gmra.mxu2 %v194_v32 }
  0x4b   : > { %303 = vmatmul.f32.vlgmr.msra.gmra.mxu3 %v195_v33  ;;  %290 = vmatpush.msra.mxu1 %v218_v31 }
  0x4c   : > { %250 = vmatmul.f32.vlgmr.msra.gmra.mxu0 %v186_v34  ;;  %291 = vmatmul.f32.vlgmr.msra.gmra.mxu1 %v187_v35 }
  0x52   : > { %265 = vmatmul.f32.gmra.mxu2 %v196_v36 }
  0x53   : > { %306 = vmatmul.f32.gmra.mxu3 %v197_v37 }
  0x54   : > { %253 = vmatmul.f32.gmra.mxu0 %v188_v38  ;;  %294 = vmatmul.f32.gmra.mxu1 %v189_v39 }
  0x5a   : > { %268 = vmatmul.f32.gmra.mxu2 %v198_v40 }
  0x5b   : > { %309 = vmatmul.f32.gmra.mxu3 %v199_v41 }
  0x5c   : > { %256 = vmatmul.f32.gmra.mxu0 %v190_v42  ;;  %297 = vmatmul.f32.gmra.mxu1 %v191_v43 }
  0x62   : > { %271 = vmatmul.f32.gmra.mxu2 %v200_v44 }
  0x63   : > { %312 = vmatmul.f32.gmra.mxu3 %v201_v45 }
  0x64   : > { %259 = vmatmul.f32.gmra.mxu0 %v192_v46  ;;  %300 = vmatmul.f32.gmra.mxu1 %v193_v47 }
  0xc9   : > { %v251_v48 = vpop.f32.mrf.mxu0  ;;  %v292_v49 = vpop.f32.mrf.mxu1 }
  0xca   : > { %v293_v50 = vadd.f32 %v292_v49, %v251_v48 }
  0xcc   : > { %316 = vst [vmem:[%s736_s6] sm:$0xff] %v293_v50 }
  0xcd   : > { %v263_v51 = vpop.f32.mrf.mxu2 }
  0xce   : > { %v304_v52 = vpop.f32.mrf.mxu3 }
  0xcf   : > { %v305_v53 = vadd.f32 %v304_v52, %v263_v51 }
  0xd1   : > { %320 = vst [vmem:[%s736_s6 + $0x20] sm:$0xff] %v305_v53  ;;  %v254_v54 = vpop.f32.mrf.mxu0  ;;  %v295_v55 = vpop.f32.mrf.mxu1 }
  0xd2   : > { %v296_v56 = vadd.f32 %v295_v55, %v254_v54 }
  0xd4   : > { %317 = vst [vmem:[%s736_s6 + $0x8] sm:$0xff] %v296_v56 }
  0xd5   : > { %v266_v57 = vpop.f32.mrf.mxu2 }
  0xd6   : > { %v307_v58 = vpop.f32.mrf.mxu3 }
  0xd7   : > { %v308_v59 = vadd.f32 %v307_v58, %v266_v57 }
  0xd9   : > { %321 = vst [vmem:[%s736_s6 + $0x28] sm:$0xff] %v308_v59  ;;  %v257_v60 = vpop.f32.mrf.mxu0  ;;  %v298_v61 = vpop.f32.mrf.mxu1 }
  0xda   : > { %v299_v62 = vadd.f32 %v298_v61, %v257_v60 }
  0xdc   : > { %318 = vst [vmem:[%s736_s6 + $0x10] sm:$0xff] %v299_v62 }
  0xdd   : > { %v269_v63 = vpop.f32.mrf.mxu2 }
  0xde   : > { %v310_v0 = vpop.f32.mrf.mxu3 }
  0xdf   : > { %v311_v1 = vadd.f32 %v310_v0, %v269_v63 }
  0xe1   : > { %322 = vst [vmem:[%s736_s6 + $0x30] sm:$0xff] %v311_v1  ;;  %v260_v2 = vpop.f32.mrf.mxu0  ;;  %v301_v3 = vpop.f32.mrf.mxu1 }
  0xe2   : > { %v302_v4 = vadd.f32 %v301_v3, %v260_v2 }
  0xe4   : > { %319 = vst [vmem:[%s736_s6 + $0x18] sm:$0xff] %v302_v4 }
  0xe5   : > { %v272_v5 = vpop.f32.mrf.mxu2 }
  0xe6   : > { %v313_v6 = vpop.f32.mrf.mxu3 }
  0xe7   : > { %v314_v7 = vadd.f32 %v313_v6, %v272_v5 }
  0xe9   : > { %323 = vst [vmem:[%s736_s6 + $0x38] sm:$0xff] %v314_v7 }
  0xea PF: > { %p13_p4 = scmp.ge.s32.totalorder %s671_s22, 4   ;;  %s766_s9 = smov %s595_s10 }
  0xeb   : > { %s767_s10 = smov %s599_s11  ;;  %s768_s11 = smov %s681_s27 }
  0xec   : > { %s769_s12 = smov %s671_s22  ;;  %15 = sbr.rel (!%p13_p4) target bundleno = 4 (0x4), region = 72 }
  0xf1   :  { %346 = vsyncpa [#allocation3], 1 }
  0xf2   :  { %348 = vsyncpa [#allocation3 + $0x1], 1 }
  0xf3   :  { %349 = vsyncpa [#allocation5], 1 }

</bundles_post_ra>
